<compile_context>
chip_gen: v5e
topology: v5e:2x2
jax: 0.10.0
libtpu: 0.0.40
codegen_flags: <defaults>
</compile_context>

<pallas_src>
import functools

import jax
import jax.numpy as jnp
from jax.experimental import pallas as pl
from jax.experimental.pallas import tpu as pltpu


def _round_up(x, m):
    return (x + m - 1) // m * m


def attention_head_kernel(xq_ref, xkv_ref, mask_ref, w_ref, b_ref, o_ref,
                          q_sc, m_sc, l_sc, acc_sc, *, mxu_dtype=None):
    """One grid step = (batch tile b, kv tile kv)."""
    kv = pl.program_id(1)
    tb, s, d_in = xq_ref.shape
    p_dim = o_ref.shape[-1]          # 128-padded head dim
    tkv = xkv_ref.shape[1]

    def mx(a):  # optional bf16 cast for MXU operands (accumulation stays f32)
        return a if mxu_dtype is None else a.astype(mxu_dtype)

    @pl.when(kv == 0)
    def _init():
        # Query projection once per batch tile; 1/sqrt(S) already folded in.
        xq2 = xq_ref[...].reshape(tb * s, d_in)
        q = jnp.dot(mx(xq2), mx(w_ref[:, :p_dim]),
                    preferred_element_type=jnp.float32) + b_ref[:, :p_dim]
        q_sc[...] = q.reshape(tb, s, p_dim)
        m_sc[...] = jnp.full(m_sc.shape, -jnp.inf, m_sc.dtype)
        l_sc[...] = jnp.zeros(l_sc.shape, l_sc.dtype)
        acc_sc[...] = jnp.zeros(acc_sc.shape, acc_sc.dtype)

    # Fused key/value projection for the current kv tile (lane-aligned slices).
    xkv2 = xkv_ref[...].reshape(tb * tkv, d_in)
    kvp = jnp.dot(mx(xkv2), mx(w_ref[:, p_dim:]),
                  preferred_element_type=jnp.float32) + b_ref[:, p_dim:]
    k = kvp[:, :p_dim].reshape(tb, tkv, p_dim)
    v = kvp[:, p_dim:].reshape(tb, tkv, p_dim)

    # Scores for this kv tile (contraction over the padded head dim -> no k.T).
    scores = jnp.einsum("bqd,bkd->bqk", mx(q_sc[...]), mx(k),
                        preferred_element_type=jnp.float32)
    # masked_fill_(mask, -1e9); mask arrives as int8, nonzero == masked.
    scores = jnp.where(mask_ref[...] != 0, jnp.float32(-1.0e9), scores)

    # Online (flash-style) softmax update over the kv axis, all math in f32.
    m_prev = m_sc[...]
    m_new = jnp.maximum(m_prev, jnp.max(scores, axis=-1, keepdims=True))
    alpha = jnp.exp(m_prev - m_new)          # exp(-inf) == 0 on the first tile
    prob = jnp.exp(scores - m_new)
    l_sc[...] = alpha * l_sc[...] + jnp.sum(prob, axis=-1, keepdims=True)
    acc_sc[...] = alpha * acc_sc[...] + jnp.einsum(
        "bqk,bkd->bqd", mx(prob), mx(v), preferred_element_type=jnp.float32)
    m_sc[...] = m_new

    @pl.when(kv == pl.num_programs(1) - 1)
    def _finalize():
        # Exact divide (no approx reciprocal) so numerics match the reference.
        o_ref[...] = (acc_sc[...] / l_sc[...]).astype(o_ref.dtype)


def attention_head(x, attention_mask, wq, bq, wk, bk, wv, bv, *,
                   tb=None, tkv=None, mxu_dtype=None,
                   vmem_budget_bytes=40 * 2 ** 20):
    """x: (B, S, D_in); attention_mask: (B, S, S) bool; weights in nn.Linear
    layout (D_out, D_in).  Set mxu_dtype=jnp.bfloat16 on v6e/v7x for extra MXU
    throughput (accumulation/softmax stay f32)."""
    B, S, D_in = x.shape
    D_out = wq.shape[0]
    P = _round_up(D_out, 128)
    itemsize = jnp.dtype(x.dtype).itemsize

    # --- Host-side, loop-invariant packing ---------------------------------
    scale = jnp.float32(1.0 / (S ** 0.5))

    def pad_w(w):                                   # (D_out, D_in) -> (D_in, P)
        return jnp.pad(w.T.astype(jnp.float32), ((0, 0), (0, P - D_out)))

    def pad_b(b):                                   # (D_out,) -> (P,)
        return jnp.pad(b.astype(jnp.float32), (0, P - D_out))

    w_packed = jnp.concatenate(
        [pad_w(wq) * scale, pad_w(wk), pad_w(wv)], axis=1).astype(x.dtype)
    b_packed = jnp.concatenate(
        [pad_b(bq) * scale, pad_b(bk), pad_b(bv)]).reshape(1, 3 * P)
    mask_i8 = attention_mask.astype(jnp.int8)

    # --- kv tile size (lane/sublane friendly) ------------------------------
    if tkv is None:
        tkv = S
        if S > 512:
            for cand in (512, 384, 256, 128):
                if S % cand == 0:
                    tkv = cand
                    break
    assert S % tkv == 0

    # --- VMEM-byte-aware batch tile ----------------------------------------
    def vmem_est(t):
        dbl = 2  # double buffering of pipelined operands
        ins = dbl * (t * S * D_in * itemsize          # x (queries)
                     + t * tkv * D_in * itemsize      # x (kv tile)
                     + t * S * tkv                    # int8 mask tile
                     + t * S * P * itemsize)          # output tile
        wts = dbl * (D_in * 3 * P * itemsize + 3 * P * 4)
        scratch = t * S * (2 * P + 16) * 4            # q, acc, m/l (lane-padded)
        temps = 4 * t * (3 * S * tkv + tkv * 2 * P + S * P)  # scores/prob, kv proj, ctx
        return ins + wts + scratch + temps

    if tb is None:
        cap = B // 2 if B > 1 else 1   # >= 2 grid steps so both v7x TCs get work
        tb = 1
        for d in range(1, B + 1):
            if B % d == 0 and d <= cap and vmem_est(d) <= vmem_budget_bytes:
                tb = d
    assert B % tb == 0
    vmem_limit = int(min(64 * 2 ** 20, max(vmem_est(tb) * 5 // 4, 32 * 2 ** 20)))

    # --- Cost hint for the XLA scheduler ------------------------------------
    flops = (2 * B * S * D_in * 3 * P      # fused qkv projection
             + 2 * B * S * S * P           # scores
             + 2 * B * S * S * P)          # context
    bytes_accessed = int(2 * x.size * itemsize + mask_i8.size
                         + w_packed.size * itemsize + b_packed.size * 4
                         + B * S * P * itemsize)
    cost = pl.CostEstimate(flops=int(flops), transcendentals=int(B * S * S),
                           bytes_accessed=bytes_accessed)

    kernel = functools.partial(attention_head_kernel, mxu_dtype=mxu_dtype)

    out_padded = pl.pallas_call(
        kernel,
        out_shape=jax.ShapeDtypeStruct((B, S, P), x.dtype),
        grid_spec=pltpu.PrefetchScalarGridSpec(
            num_scalar_prefetch=0,
            grid=(B // tb, S // tkv),
            in_specs=[
                pl.BlockSpec((tb, S, D_in), lambda b, kv: (b, 0, 0)),     # x (queries)
                pl.BlockSpec((tb, tkv, D_in), lambda b, kv: (b, kv, 0)),  # x (kv tile)
                pl.BlockSpec((tb, S, tkv), lambda b, kv: (b, 0, kv)),     # mask tile
                pl.BlockSpec((D_in, 3 * P), lambda b, kv: (0, 0)),        # packed W
                pl.BlockSpec((1, 3 * P), lambda b, kv: (0, 0)),           # packed b
            ],
            out_specs=pl.BlockSpec((tb, S, P), lambda b, kv: (b, 0, 0)),
            scratch_shapes=[
                pltpu.VMEM((tb, S, P), jnp.float32),   # q (resident over kv axis)
                pltpu.VMEM((tb, S, 1), jnp.float32),   # running max m
                pltpu.VMEM((tb, S, 1), jnp.float32),   # running denom l
                pltpu.VMEM((tb, S, P), jnp.float32),   # running context acc
            ]),
        compiler_params=pltpu.CompilerParams(
            dimension_semantics=("parallel", "arbitrary"),
            vmem_limit_bytes=vmem_limit),
        cost_estimate=cost,
    )(x, x, mask_i8, w_packed, b_packed)

    return out_padded[:, :, :D_out]


def attention_head_ref(x, attention_mask, wq, bq, wk, bk, wv, bv):
    """Pure-JAX reference mirroring the PyTorch forward."""
    q = x @ wq.T + bq
    k = x @ wk.T + bk
    v = x @ wv.T + bv
    S = x.shape[1]
    scores = jnp.einsum("bqd,bkd->bqk", q, k) / (S ** 0.5)
    scores = jnp.where(attention_mask, -1.0e9, scores)
    attn = jax.nn.softmax(scores, axis=-1)
    return jnp.einsum("bqk,bkd->bqd", attn, v)


if __name__ == "__main__":
    B, S, D_in, D_out = 2, 8, 32, 32

    key = jax.random.PRNGKey(0)
    kx, kmask, kwq, kbq, kwk, kbk, kwv, kbv = jax.random.split(key, 8)

    x = jax.random.normal(kx, (B, S, D_in), dtype=jnp.float32)

    # Key-padding style mask: last 2 key positions masked for every query row
    # in batch 1, plus a few random masked entries in batch 0.
    pad = jnp.zeros((B, S, S), dtype=bool)
    pad = pad.at[1, :, S - 2:].set(True)
    rand_bits = jax.random.bernoulli(kmask, p=0.1, shape=(S, S))
    pad = pad.at[0].set(rand_bits)
    attention_mask = pad

    # Deterministic nn.Linear-like uniform init.
    lim = 1.0 / (D_in ** 0.5)
    wq = jax.random.uniform(kwq, (D_out, D_in), jnp.float32, -lim, lim)
    bq = jax.random.uniform(kbq, (D_out,), jnp.float32, -lim, lim)
    wk = jax.random.uniform(kwk, (D_out, D_in), jnp.float32, -lim, lim)
    bk = jax.random.uniform(kbk, (D_out,), jnp.float32, -lim, lim)
    wv = jax.random.uniform(kwv, (D_out, D_in), jnp.float32, -lim, lim)
    bv = jax.random.uniform(kbv, (D_out,), jnp.float32, -lim, lim)

    out = attention_head(x, attention_mask, wq, bq, wk, bk, wv, bv)
    out = jax.block_until_ready(out)

    ref = attention_head_ref(x, attention_mask, wq, bq, wk, bk, wv, bv)
    assert out.shape == (B, S, D_out)
    # Softmax math and accumulation are f32 and the denominator is an exact
    # divide; the tolerance only has to absorb MXU f32-matmul pass differences
    # across TPU generations.
    err = float(jnp.max(jnp.abs(out - ref)))
    assert jnp.allclose(out, ref, atol=1e-2, rtol=1e-2), f"mismatch vs reference (max abs err {err:.3e})"

    print("KERNEL_OK")
</pallas_src>

<mosaic_0001>
module attributes {stable_mosaic.version = 11 : i64} {
  func.func @attention_head_kernel(%arg0: i32, %arg1: i32, %arg2: memref<1x8x32xf32, #tpu.memory_space<vmem>>, %arg3: memref<1x8x32xf32, #tpu.memory_space<vmem>>, %arg4: memref<1x8x8xi8, #tpu.memory_space<vmem>>, %arg5: memref<32x384xf32, #tpu.memory_space<vmem>>, %arg6: memref<1x384xf32, #tpu.memory_space<vmem>>, %arg7: memref<1x8x128xf32, #tpu.memory_space<vmem>>, %arg8: memref<1x8x128xf32, #tpu.memory_space<vmem>>, %arg9: memref<1x8x1xf32, #tpu.memory_space<vmem>>, %arg10: memref<1x8x1xf32, #tpu.memory_space<vmem>>, %arg11: memref<1x8x128xf32, #tpu.memory_space<vmem>>) attributes {dimension_semantics = [#tpu.dimension_semantics<parallel>, #tpu.dimension_semantics<arbitrary>], iteration_bounds = array<i64: 2, 1>, scalar_prefetch = 0 : i64, scratch_operands = 4 : i64, tpu.core_type = #tpu.core_type<tc>, window_params = [{transform_indices = @transform_0, window_bounds = array<i64: 1, 8, 32>}, {transform_indices = @transform_1, window_bounds = array<i64: 1, 8, 32>}, {transform_indices = @transform_2, window_bounds = array<i64: 1, 8, 8>}, {pipeline_mode = #tpu.pipeline_mode<synchronous>, transform_indices = @transform_3, window_bounds = array<i64: 32, 384>}, {pipeline_mode = #tpu.pipeline_mode<synchronous>, transform_indices = @transform_4, window_bounds = array<i64: 1, 384>}, {transform_indices = @transform_5, window_bounds = array<i64: 1, 8, 128>}]} {
    %c0_i32 = arith.constant 0 : i32
    %0 = arith.cmpi eq, %arg1, %c0_i32 : i32
    %1 = arith.extui %0 : i1 to i32
    %c0_i32_0 = arith.constant 0 : i32
    %2 = arith.cmpi ne, %1, %c0_i32_0 : i32
    scf.if %2 {
      %c0_37 = arith.constant 0 : index
      %c0_38 = arith.constant 0 : index
      %c0_39 = arith.constant 0 : index
      %46 = vector.load %arg2[%c0_37, %c0_38, %c0_39] : memref<1x8x32xf32, #tpu.memory_space<vmem>>, vector<1x8x32xf32>
      %47 = vector.shape_cast %46 : vector<1x8x32xf32> to vector<8x32xf32>
      %c0_40 = arith.constant 0 : index
      %c0_41 = arith.constant 0 : index
      %48 = vector.load %arg5[%c0_40, %c0_41] : memref<32x384xf32, #tpu.memory_space<vmem>>, vector<32x128xf32>
      %cst_42 = arith.constant dense<0.000000e+00> : vector<8x128xf32>
      %49 = tpu.matmul %47, %48, %cst_42 {dimension_numbers = #tpu.dot_dimension_numbers<[1], [0], [0], [1], [0, 0, 1, 1], [], []>} : vector<8x32xf32>, vector<32x128xf32>, vector<8x128xf32> -> vector<8x128xf32>
      %c0_43 = arith.constant 0 : index
      %c0_44 = arith.constant 0 : index
      %50 = vector.load %arg6[%c0_43, %c0_44] : memref<1x384xf32, #tpu.memory_space<vmem>>, vector<1x128xf32>
      %51 = vector.broadcast %50 : vector<1x128xf32> to vector<8x128xf32>
      %52 = arith.addf %49, %51 : vector<8x128xf32>
      %53 = vector.shape_cast %52 : vector<8x128xf32> to vector<1x8x128xf32>
      %c0_45 = arith.constant 0 : index
      %c0_46 = arith.constant 0 : index
      %c0_47 = arith.constant 0 : index
      %54 = vector.load %arg8[%c0_45, %c0_46, %c0_47] : memref<1x8x128xf32, #tpu.memory_space<vmem>>, vector<1x8x128xf32>
      tpu.vector_store %arg8[%c0_45, %c0_46, %c0_47], %53 {strides = array<i32>} : memref<1x8x128xf32, #tpu.memory_space<vmem>>, vector<1x8x128xf32>,
      %cst_48 = arith.constant 0xFF800000 : f32
      %55 = vector.broadcast %cst_48 : f32 to vector<1x8x1xf32>
      %c0_49 = arith.constant 0 : index
      %c0_50 = arith.constant 0 : index
      %c0_51 = arith.constant 0 : index
      %56 = vector.load %arg9[%c0_49, %c0_50, %c0_51] : memref<1x8x1xf32, #tpu.memory_space<vmem>>, vector<1x8x1xf32>
      tpu.vector_store %arg9[%c0_49, %c0_50, %c0_51], %55 {strides = array<i32>} : memref<1x8x1xf32, #tpu.memory_space<vmem>>, vector<1x8x1xf32>,
      %cst_52 = arith.constant 0.000000e+00 : f32
      %57 = vector.broadcast %cst_52 : f32 to vector<1x8x1xf32>
      %c0_53 = arith.constant 0 : index
      %c0_54 = arith.constant 0 : index
      %c0_55 = arith.constant 0 : index
      %58 = vector.load %arg10[%c0_53, %c0_54, %c0_55] : memref<1x8x1xf32, #tpu.memory_space<vmem>>, vector<1x8x1xf32>
      tpu.vector_store %arg10[%c0_53, %c0_54, %c0_55], %57 {strides = array<i32>} : memref<1x8x1xf32, #tpu.memory_space<vmem>>, vector<1x8x1xf32>,
      %cst_56 = arith.constant 0.000000e+00 : f32
      %59 = vector.broadcast %cst_56 : f32 to vector<1x8x128xf32>
      %c0_57 = arith.constant 0 : index
      %c0_58 = arith.constant 0 : index
      %c0_59 = arith.constant 0 : index
      %60 = vector.load %arg11[%c0_57, %c0_58, %c0_59] : memref<1x8x128xf32, #tpu.memory_space<vmem>>, vector<1x8x128xf32>
      tpu.vector_store %arg11[%c0_57, %c0_58, %c0_59], %59 {strides = array<i32>} : memref<1x8x128xf32, #tpu.memory_space<vmem>>, vector<1x8x128xf32>,
    } else {
    }
    %c0 = arith.constant 0 : index
    %c0_1 = arith.constant 0 : index
    %c0_2 = arith.constant 0 : index
    %3 = vector.load %arg3[%c0, %c0_1, %c0_2] : memref<1x8x32xf32, #tpu.memory_space<vmem>>, vector<1x8x32xf32>
    %4 = vector.shape_cast %3 : vector<1x8x32xf32> to vector<8x32xf32>
    %c0_3 = arith.constant 0 : index
    %c128 = arith.constant 128 : index
    %5 = vector.load %arg5[%c0_3, %c128] : memref<32x384xf32, #tpu.memory_space<vmem>>, vector<32x256xf32>
    %cst = arith.constant dense<0.000000e+00> : vector<8x256xf32>
    %6 = tpu.matmul %4, %5, %cst {dimension_numbers = #tpu.dot_dimension_numbers<[1], [0], [0], [1], [0, 0, 1, 1], [], []>} : vector<8x32xf32>, vector<32x256xf32>, vector<8x256xf32> -> vector<8x256xf32>
    %c0_4 = arith.constant 0 : index
    %c128_5 = arith.constant 128 : index
    %7 = vector.load %arg6[%c0_4, %c128_5] : memref<1x384xf32, #tpu.memory_space<vmem>>, vector<1x256xf32>
    %8 = vector.broadcast %7 : vector<1x256xf32> to vector<8x256xf32>
    %9 = arith.addf %6, %8 : vector<8x256xf32>
    %10 = vector.extract_strided_slice %9 {offsets = [0, 0], sizes = [8, 128], strides = [1, 1]} : vector<8x256xf32> to vector<8x128xf32>
    %11 = vector.shape_cast %10 : vector<8x128xf32> to vector<1x8x128xf32>
    %12 = vector.extract_strided_slice %9 {offsets = [0, 128], sizes = [8, 128], strides = [1, 1]} : vector<8x256xf32> to vector<8x128xf32>
    %13 = vector.shape_cast %12 : vector<8x128xf32> to vector<1x8x128xf32>
    %c0_6 = arith.constant 0 : index
    %c0_7 = arith.constant 0 : index
    %c0_8 = arith.constant 0 : index
    %14 = vector.load %arg8[%c0_6, %c0_7, %c0_8] : memref<1x8x128xf32, #tpu.memory_space<vmem>>, vector<1x8x128xf32>
    "tpu.trace_start"() <{level = 10 : i32, message = "bqd,bkd->bqk"}> : () -> ()
    %cst_9 = arith.constant dense<0.000000e+00> : vector<1x8x8xf32>
    %15 = tpu.matmul %14, %11, %cst_9 {dimension_numbers = #tpu.dot_dimension_numbers<[2], [2], [1], [1], [0, 0, 0, 1, 1, 1], [0], [0]>} : vector<1x8x128xf32>, vector<1x8x128xf32>, vector<1x8x8xf32> -> vector<1x8x8xf32>
    "tpu.trace_stop"() : () -> ()
    %c0_10 = arith.constant 0 : index
    %c0_11 = arith.constant 0 : index
    %c0_12 = arith.constant 0 : index
    %16 = vector.load %arg4[%c0_10, %c0_11, %c0_12] : memref<1x8x8xi8, #tpu.memory_space<vmem>>, vector<1x8x8xi8>
    %c0_i8 = arith.constant 0 : i8
    %17 = vector.broadcast %c0_i8 : i8 to vector<1x8x8xi8>
    %18 = arith.cmpi ne, %16, %17 : vector<1x8x8xi8>
    %cst_13 = arith.constant -1.000000e+09 : f32
    %19 = vector.broadcast %cst_13 : f32 to vector<1x8x8xf32>
    %20 = arith.select %18, %19, %15 : vector<1x8x8xi1>, vector<1x8x8xf32>
    %c0_14 = arith.constant 0 : index
    %c0_15 = arith.constant 0 : index
    %c0_16 = arith.constant 0 : index
    %21 = vector.load %arg9[%c0_14, %c0_15, %c0_16] : memref<1x8x1xf32, #tpu.memory_space<vmem>>, vector<1x8x1xf32>
    %cst_17 = arith.constant dense<0xFF800000> : vector<1x8xf32>
    %22 = vector.multi_reduction <maximumf>, %20, %cst_17 [2] : vector<1x8x8xf32> to vector<1x8xf32>
    %23 = vector.shape_cast %22 : vector<1x8xf32> to vector<1x8x1xf32>
    %24 = arith.maximumf %21, %23 : vector<1x8x1xf32>
    %25 = arith.subf %21, %24 : vector<1x8x1xf32>
    %26 = math.exp %25 : vector<1x8x1xf32>
    %27 = vector.broadcast %24 : vector<1x8x1xf32> to vector<1x8x8xf32>
    %28 = arith.subf %20, %27 : vector<1x8x8xf32>
    %29 = math.exp %28 : vector<1x8x8xf32>
    %c0_18 = arith.constant 0 : index
    %c0_19 = arith.constant 0 : index
    %c0_20 = arith.constant 0 : index
    %30 = vector.load %arg10[%c0_18, %c0_19, %c0_20] : memref<1x8x1xf32, #tpu.memory_space<vmem>>, vector<1x8x1xf32>
    %31 = arith.mulf %26, %30 : vector<1x8x1xf32>
    %cst_21 = arith.constant dense<0.000000e+00> : vector<1x8xf32>
    %32 = vector.multi_reduction <add>, %29, %cst_21 [2] : vector<1x8x8xf32> to vector<1x8xf32>
    %33 = vector.shape_cast %32 : vector<1x8xf32> to vector<1x8x1xf32>
    %34 = arith.addf %31, %33 : vector<1x8x1xf32>
    %c0_22 = arith.constant 0 : index
    %c0_23 = arith.constant 0 : index
    %c0_24 = arith.constant 0 : index
    %35 = vector.load %arg10[%c0_22, %c0_23, %c0_24] : memref<1x8x1xf32, #tpu.memory_space<vmem>>, vector<1x8x1xf32>
    tpu.vector_store %arg10[%c0_22, %c0_23, %c0_24], %34 {strides = array<i32>} : memref<1x8x1xf32, #tpu.memory_space<vmem>>, vector<1x8x1xf32>,
    %c0_25 = arith.constant 0 : index
    %c0_26 = arith.constant 0 : index
    %c0_27 = arith.constant 0 : index
    %36 = vector.load %arg11[%c0_25, %c0_26, %c0_27] : memref<1x8x128xf32, #tpu.memory_space<vmem>>, vector<1x8x128xf32>
    %37 = vector.broadcast %26 : vector<1x8x1xf32> to vector<1x8x128xf32>
    %38 = arith.mulf %37, %36 : vector<1x8x128xf32>
    "tpu.trace_start"() <{level = 10 : i32, message = "bqk,bkd->bqd"}> : () -> ()
    %cst_28 = arith.constant dense<0.000000e+00> : vector<1x8x128xf32>
    %39 = tpu.matmul %29, %13, %cst_28 {dimension_numbers = #tpu.dot_dimension_numbers<[2], [1], [1], [2], [0, 0, 0, 1, 1, 2], [0], [0]>} : vector<1x8x8xf32>, vector<1x8x128xf32>, vector<1x8x128xf32> -> vector<1x8x128xf32>
    "tpu.trace_stop"() : () -> ()
    %40 = arith.addf %38, %39 : vector<1x8x128xf32>
    %c0_29 = arith.constant 0 : index
    %c0_30 = arith.constant 0 : index
    %c0_31 = arith.constant 0 : index
    %41 = vector.load %arg11[%c0_29, %c0_30, %c0_31] : memref<1x8x128xf32, #tpu.memory_space<vmem>>, vector<1x8x128xf32>
    tpu.vector_store %arg11[%c0_29, %c0_30, %c0_31], %40 {strides = array<i32>} : memref<1x8x128xf32, #tpu.memory_space<vmem>>, vector<1x8x128xf32>,
    %c0_32 = arith.constant 0 : index
    %c0_33 = arith.constant 0 : index
    %c0_34 = arith.constant 0 : index
    %42 = vector.load %arg9[%c0_32, %c0_33, %c0_34] : memref<1x8x1xf32, #tpu.memory_space<vmem>>, vector<1x8x1xf32>
    tpu.vector_store %arg9[%c0_32, %c0_33, %c0_34], %24 {strides = array<i32>} : memref<1x8x1xf32, #tpu.memory_space<vmem>>, vector<1x8x1xf32>,
    %c0_i32_35 = arith.constant 0 : i32
    %43 = arith.cmpi eq, %arg1, %c0_i32_35 : i32
    %44 = arith.extui %43 : i1 to i32
    %c0_i32_36 = arith.constant 0 : i32
    %45 = arith.cmpi ne, %44, %c0_i32_36 : i32
    scf.if %45 {
      %c0_37 = arith.constant 0 : index
      %c0_38 = arith.constant 0 : index
      %c0_39 = arith.constant 0 : index
      %46 = vector.load %arg11[%c0_37, %c0_38, %c0_39] : memref<1x8x128xf32, #tpu.memory_space<vmem>>, vector<1x8x128xf32>
      %c0_40 = arith.constant 0 : index
      %c0_41 = arith.constant 0 : index
      %c0_42 = arith.constant 0 : index
      %47 = vector.load %arg10[%c0_40, %c0_41, %c0_42] : memref<1x8x1xf32, #tpu.memory_space<vmem>>, vector<1x8x1xf32>
      %48 = vector.broadcast %47 : vector<1x8x1xf32> to vector<1x8x128xf32>
      %49 = arith.divf %46, %48 : vector<1x8x128xf32>
      %c0_43 = arith.constant 0 : index
      %c0_44 = arith.constant 0 : index
      %c0_45 = arith.constant 0 : index
      %50 = vector.load %arg7[%c0_43, %c0_44, %c0_45] : memref<1x8x128xf32, #tpu.memory_space<vmem>>, vector<1x8x128xf32>
      tpu.vector_store %arg7[%c0_43, %c0_44, %c0_45], %49 {strides = array<i32>} : memref<1x8x128xf32, #tpu.memory_space<vmem>>, vector<1x8x128xf32>,
    } else {
    }
    return
  }
  func.func @transform_0(%arg0: i32, %arg1: i32) -> (i32, i32, i32) {
    %c0_i32 = arith.constant 0 : i32
    %c0_i32_0 = arith.constant 0 : i32
    %c0_i32_1 = arith.constant 0 : i32
    return %arg0, %c0_i32, %c0_i32_0 : i32, i32, i32
  }
  func.func @transform_1(%arg0: i32, %arg1: i32) -> (i32, i32, i32) {
    %c0_i32 = arith.constant 0 : i32
    %c0_i32_0 = arith.constant 0 : i32
    return %arg0, %arg1, %c0_i32 : i32, i32, i32
  }
  func.func @transform_2(%arg0: i32, %arg1: i32) -> (i32, i32, i32) {
    %c0_i32 = arith.constant 0 : i32
    %c0_i32_0 = arith.constant 0 : i32
    return %arg0, %c0_i32, %arg1 : i32, i32, i32
  }
  func.func @transform_3(%arg0: i32, %arg1: i32) -> (i32, i32) {
    %c0_i32 = arith.constant 0 : i32
    %c0_i32_0 = arith.constant 0 : i32
    %c0_i32_1 = arith.constant 0 : i32
    return %c0_i32, %c0_i32_0 : i32, i32
  }
  func.func @transform_4(%arg0: i32, %arg1: i32) -> (i32, i32) {
    %c0_i32 = arith.constant 0 : i32
    %c0_i32_0 = arith.constant 0 : i32
    %c0_i32_1 = arith.constant 0 : i32
    return %c0_i32, %c0_i32_0 : i32, i32
  }
  func.func @transform_5(%arg0: i32, %arg1: i32) -> (i32, i32, i32) {
    %c0_i32 = arith.constant 0 : i32
    %c0_i32_0 = arith.constant 0 : i32
    %c0_i32_1 = arith.constant 0 : i32
    return %arg0, %c0_i32, %c0_i32_0 : i32, i32, i32
  }
}

</mosaic_0001>

<bundles_post_ra>
// kernel: tpu_custom_call.1
= control target key start
LH: loop header
LB: loop body
LE: loop exit
PB: predicated region body
PF: predicated region fallthrough
CT: control target
= control target key end

     0   :  { %s1296_s0 = inlined_call_operand.hbm [shape: f32[2,8,32], index: 0, kind: input, shape index: {}]   ;;  %s1297_s1 = inlined_call_operand.hbm [shape: f32[2,8,32], index: 1, kind: input, shape index: {}]   ;;  %s1298_s2 = inlined_call_operand.hbm [shape: s8[2,8,8], index: 2, kind: input, shape index: {}]   ;;  %s1299_s3 = inlined_call_operand.hbm [shape: f32[32,384], index: 3, kind: input, shape index: {}]   ;;  %s1300_s4 = inlined_call_operand.vmem [shape: f32[1,384], index: 4, kind: input, shape index: {}]   ;;  %s1301_s5 = inlined_call_operand.hbm [shape: f32[2,8,128], index: 5, kind: output, shape index: {}]  }
   0x1   :  { %1309 = sst [smem:[#allocation25_spill]] %s1297_s1 }
   0x2   :  { %1310 = sst [smem:[#allocation26_spill]] %s1299_s3 }
   0x3   :  { %10 = vsyncpa [#allocation7], 0 }
   0x4   :  { %12 = vsyncpa [#allocation7 + $0x1], 0 }
   0x5   :  { %13 = vsyncpa [#allocation10], 0 }
   0x6   :  { %15 = vsyncpa [#allocation10 + $0x1], 0 }
   0x7   :  { %16 = vsyncpa [#allocation13], 0 }
   0x8   :  { %17 = vsyncpa [#allocation8], 0 }
   0x9   :  { %19 = vsyncpa [#allocation8 + $0x1], 0  ;;  %s1086_s18 = smov 0   ;;  %s1088_s19 = smov 0  }
   0xa   :  { %s1090_s20 = smov 0   ;;  %s1092_s21 = smov 0  }
   0xb   :  { %s1094_s22 = smov 0   ;;  %s1096_s23 = smov 0  }
   0xc LB: > { %1311 = sst [smem:[#allocation19_spill]] %s1028_s18  ;;  %s1117_s24 = sadd.s32 4294967295, %s1048_s23   ;;  %s1048_s23 = sphi %s1096_s23, %s25_s23   ;;  %s1044_s22 = sphi %s1094_s22, %s1335_s22   ;;  %s1040_s21 = sphi %s1092_s21, %s1334_s21   ;;  %s1036_s20 = sphi %s1090_s20, %s1330_s20   ;;  %s1032_s19 = sphi %s1088_s19, %s1333_s19   ;;  %s1028_s18 = sphi %s1086_s18, %s1332_s18  }
   0xd   : > { %1312 = sst [smem:[#allocation20_spill]] %s1036_s20  ;;  %s716_s25 = sadd.s32 4294967294, %s1048_s23  }
   0xe   : > { %1313 = sst [smem:[#allocation21_spill]] %s1048_s23  ;;  %s37_s26 = sadd.s32 1, %s1044_s22 }
   0xf   : > { %s44_s27 = sadd.s32 1, %s1036_s20  ;;  %p39_p0 = scmp.ge.s32.totalorder %s37_s26, 2 }
  0x10   : > { %p51_p1 = scmp.ne.s32.totalorder %s1036_s20, %s1032_s19  ;;  %p52_p2 = scmp.eq.s32.totalorder %s1048_s23, 0 }
  0x11   : > { %p57_p3 = scmp.ne.s32.totalorder %s1032_s19, %s1028_s18  ;;  %s1337_s26 = smov (%p39_p0, %s37_s26), 0 }
  0x12   : > { %1314 = sst [smem:[#allocation22_spill]] %s1337_s26  ;;  %p1129_p4 = por %p52_p2, %p51_p1 }
  0x13   : > { %p179_p5 = scmp.eq.s32.totalorder %s1117_s24, 1  ;;  %s41_s29 = ssub.s32 %s1044_s22, %s1337_s26 }
  0x14   : > { %p185_p6 = scmp.eq.s32.totalorder %s716_s25, 1  ;;  %p42_p7 = scmp.eq.s32.totalorder %s41_s29, 0 }
  0x15   : > { %p1136_p8 = por %p179_p5, %p51_p1  ;;  %p719_p10 = scmp.ge.s32.totalorder %s1048_s23, 2 }
  0x16   : > { %p1143_p9 = por %p185_p6, %p57_p3  ;;  %p771_p11 = scmp.lt.s32.totalorder %s1048_s23, 2 }
  0x17   : > { %s1148_s7 = scalar_select %p42_p7, %s1036_s20, %s44_s27  }
  0x18   : > { %s1317_s6 = scalar_select %p1143_p9, 1, 0 }
  0x19   : > { %1319 = sst [smem:[#allocation24_spill]] %s1148_s7  ;;  %s1153_s8 = sand.u32 1, %s1036_s20  }
  0x1a   : > { %1318 = sst [smem:[#allocation23_spill]] %s1317_s6  ;;  %s721_s9 = sshll.u32 %s1044_s22, 3 }
  0x1b   : > { %s1302_s10 = sshll.u32 %s1153_s8, 3  ;;  %p1159_p12 = pnand %p771_p11, %p1129_p4 }
  0x1c   : > { %s241_s12 = sand.u32 1, %s1048_s23   ;;  %s1321_s1 = sld [smem:[#allocation25_spill]] }
  0x1d   : > { %s245_s16 = scalar_lea.vmem [#allocation9], %s1302_s10  ;;  %s1169_s27 = scalar_lea.sflag [#allocation10], %s241_s12 }
  0x1e   : > { %s254_s17 = sshll.u32 %s245_s16, 4  ;;  %p58_p13 = scmp.eq.s32.totalorder %s1117_s24, 0  ;;  %s255_s17 = int_to_ptr.vmem [resolvable:$true] %s254_s17 }
  0x1f   : > { %p717_p0 = scmp.ge.s32.totalorder %s1048_s23, 1  ;;  %p192_p1 = scmp.lt.s32.totalorder %s1048_s23, 3 }
  0x20   : > { %p1182_p2 = por %p58_p13, %p57_p3  ;;  %s1323_s3 = sld [smem:[#allocation26_spill]] }
  0x21   : > { %p1189_p4 = pnand %p717_p0, %p192_p1  ;;  %s230_s29 = scalar_lea.hbm %s1296_s0, %s721_s9 }
  0x22   : > { %s250_s15 = scalar_lea.hbm %s1321_s1, %s721_s9  ;;  %s232_s13 = sshll.u32 %s230_s29, 4  ;;  %s233_s13 = int_to_ptr.hbm [resolvable:$true] %s232_s13 }
  0x23   : > { %s252_s25 = sshll.u32 %s250_s15, 4  ;;  %p752_p5 = pneg %p1189_p4  ;;  %s253_s25 = int_to_ptr.hbm [resolvable:$true] %s252_s25 }
  0x24   : > { %762 = dma.hbm_to_vmem [thread:$0]  (!%p1159_p12), %s253_s25, 128, %s255_s17, %s1169_s27  }
  0x25   : > { %s1050_s15 = smov [#allocation12]   ;;  %p753_p3 = pnand %p752_p5, %p58_p13 }
  0x26   : > { %s203_s14 = sshll.u32 %s1323_s3, 4  ;;  %s205_s16 = sshll.u32 %s1050_s15, 4  ;;  %s204_s14 = int_to_ptr.hbm [resolvable:$true] %s203_s14  ;;  %s206_s16 = int_to_ptr.vmem [resolvable:$true] %s205_s16 }
  0x27   : > { %s1051_s10 = smov 384   ;;  %s1052_s1 = smov 24  }
  0x28   : > { %755 = dma.hbm_to_vmem [thread:$0]  (!%p753_p3), %s204_s14, 1536, %s206_s16, [#allocation13], %s1051_s10, %s1051_s10, %s1052_s1  }
  0x29   : > { %s1325_s3 = sshll.u32 %s1153_s8, 3  ;;  %s724_s20 = sshll.u32 %s1153_s8, 1 }
  0x2a   : > { %s226_s26 = scalar_lea.vmem [#allocation6], %s1325_s3  ;;  %s223_s15 = scalar_lea.sflag [#allocation7], %s1153_s8 }
  0x2b   : > { %s234_s7 = sshll.u32 %s226_s26, 4  ;;  %s725_s23 = sshll.u32 %s1044_s22, 1  ;;  %s235_s7 = int_to_ptr.vmem [resolvable:$true] %s234_s7 }
  0x2c   : > { %759 = dma.hbm_to_vmem [thread:$0]  (!%p1159_p12), %s233_s13, 128, %s235_s7, %s223_s15  }
  0x2d   : > { %s270_s9 = scalar_lea.hbm %s1298_s2, %s725_s23  ;;  %s265_s17 = scalar_lea.vmem [#allocation11], %s724_s20 }
  0x2e   : > { %s274_s25 = sshll.u32 %s265_s17, 4  ;;  %s272_s29 = sshll.u32 %s270_s9, 4  ;;  %s275_s25 = int_to_ptr.vmem [resolvable:$true] %s274_s25  ;;  %s273_s29 = int_to_ptr.hbm [resolvable:$true] %s272_s29 }
  0x2f   : > { %765 = dma.hbm_to_vmem [thread:$0]  (!%p1159_p12), %s273_s29, 32, %s275_s25, %s1169_s27  }
  0x30   : > { %283 = sbr.rel (%p1189_p4) target bundleno = 841 (0x349), region = 40  ;;  %s1216_s1 = sand.u32 (!%p1189_p4), 1, %s1032_s19  }
  0x31   : > { %s1219_s3 = sshll.u32 (!%p1189_p4), %s1216_s1, 3  ;;  %s286_s18 = scalar_lea.sflag (!%p1189_p4), [#allocation7], %s1216_s1 }
  0x32   : > { %s289_s20 = scalar_lea.vmem (!%p1189_p4), [#allocation6], %s1219_s3 }
  0x35   : > { %1011 = dma.done.wait (%p1182_p2), %s286_s18, 128  }
  0x36   : > { %1013 = vsyncadd (%p1182_p2), %s286_s18, 4294967168  ;;  %s295_s23 = sand.u32 1, %s1117_s24   ;;  %s299_s6 = scalar_lea.vmem [#allocation9], %s1219_s3 }
  0x37   : > { %s296_s26 = scalar_lea.sflag [#allocation10], %s295_s23 }
  0x38   : > { %1015 = dma.done.wait (%p1182_p2), %s296_s26, 160  }
  0x39   : > { %1017 = vsyncadd (%p1182_p2), %s296_s26, 4294967136  ;;  %s729_s7 = sshll.u32 %s1216_s1, 1 }
  0x3a   : > { %s1234_s8 = scalar_lea.vmem [#allocation11], %s729_s7 }
  0x3b   : > { %1019 = dma.done.wait (%p58_p13), [#allocation13], 1536  }
  0x3c   : > { %1021 = vsyncadd (%p58_p13), [#allocation13], 4294965760  ;;  %v403_v0 = vld [vmem:[#allocation12 + $0x50] sm:$0xff]  ;;  %v401_v1 = vld [vmem:[#allocation12 + $0x38] sm:$0xff]  ;;  %vm367_vm0 = vcmask 261120   ;;  %v1053_v17 = vmov 0  }
  0x3d   : > { %v362_v2 = vld [vmem:[#allocation12 + $0x48] sm:$0xff]  ;;  %427 = vmatpush.msra.mxu1 %v403_v0  ;;  %v361_v3 = vld [vmem:[#allocation12 + $0x30] sm:$0xff]  ;;  %v399_v4 = vld [vmem:[#allocation12 + $0x20] sm:$0xff]  ;;  %828 = vset.pattern.permute.xlu0 %v1053_v17  ;;  %vm392_vm1 = vcmask 7168   ;;  %v1054_v20 = vmov -inf   ;;  %vm483_vm4 = vcmask 64512  }
  0x3e   : > { %383 = vmatpush.msra.mxu0 %v362_v2  ;;  %v360_v5 = vld [vmem:[#allocation12 + $0x18] sm:$0xff]  ;;  %v397_v6 = vld [vmem:[#allocation12 + $0x8] sm:$0xff]  ;;  %v359_v7 = vld [vmem:[#allocation12] sm:$0xff]  ;;  %830 = vset.pattern.permute.xlu2 %v1053_v17  ;;  %393 = vst.msk [vmem:[#allocation3] sm:$0xff] %vm392_vm1, %v1054_v20  ;;  %v1055_v29 = vmov 0.0   ;;  %s737_s28 = sshll.u32 %s1040_s21, 3 }
  0x3f   : > { %428 = vmatpush.msra.mxu1 %v401_v1  ;;  %v396_v8 = vld [vmem:[%s299_s6] sm:$0xff]  ;;  %v358_v9 = vld [vmem:[%s289_s20] sm:$0xff]  ;;  %829 = vset.pattern.permute.xlu1 %v1053_v17  ;;  %394 = vst.msk [vmem:[#allocation4] sm:$0xff] %vm392_vm1, %v1055_v29  ;;  %s577_s16 = scalar_lea.hbm %s1301_s5, %s737_s28  ;;  %s351_s13 = scalar_lea.vmem [#allocation14], %s1219_s3 }
  0x40   : > { %384 = vmatpush.msra.mxu0 %v361_v3  ;;  %v405_v10 = vld [vmem:[%s1300_s4 + $0x1] sm:$0x3]  ;;  %v831_v12 = vld [vmem:[%s1300_s4] ss:$0 sm:$0xff]  ;;  %v404_v18 = vld [vmem:[#allocation12 + $0x58] sm:$0xff]  ;;  %s579_s21 = sshll.u32 %s351_s13, 4  ;;  %s580_s21 = int_to_ptr.vmem [resolvable:$true] %s579_s21 }
  0x41   : > { %429 = vmatpush.msra.mxu1 %v399_v4  ;;  %v407_v11 = vperm.slane %v405_v10, 0  ;;  %v402_v19 = vld [vmem:[#allocation12 + $0x40] sm:$0xff]  ;;  %447 = vmatpush.msra.mxu2 %v404_v18  ;;  %v400_v21 = vld [vmem:[#allocation12 + $0x28] sm:$0xff]  ;;  %v398_v22 = vld [vmem:[#allocation12 + $0x10] sm:$0xff]  ;;  %v408_v36 = vperm.slane %v405_v10, 1  ;;  %s581_s15 = sshll.u32 %s577_s16, 4  ;;  %s582_s15 = int_to_ptr.hbm [resolvable:$true] %s581_s15 }
  0x42   : > { %385 = vmatpush.msra.mxu0 %v360_v5  ;;  %v476_v23 = vld [vmem:[%s1234_s8] sm:$0x3]  ;;  %s567_s9 = scalar_lea.sflag [#allocation8], %s1216_s1  ;;  %s972_s17 = sshra.s32 %s582_s15, 4  ;;  %s973_s17 = int_to_ptr.hbm [resolvable:$true] %s972_s17 }
  0x43   : > { %430 = vmatpush.msra.mxu1 %v397_v6  ;;  %448 = vmatpush.msra.mxu2 %v402_v19  ;;  %vm477_vm2 = vnez %v476_v23  ;;  %s974_s25 = scalar_lea.hbm %s973_s17, 8  ;;  %s978_s18 = scalar_lea.hbm %s1301_s5, 16 }
  0x44   : > { %386 = vmatpush.msra.mxu0 %v359_v7  ;;  %733 = vmatmul.msk.f32.vlgmr.msra.gmra.mxu1 %vm367_vm0, %v396_v8  ;;  %v478_v24 = vsel %vm477_vm2, 16843009, %v1053_v17  ;;  %p975_p6 = scmp.ne.s32.totalorder %s973_s17, %s974_s25  ;;  %p979_p12 = scmp.lt.s32.totalorder %s973_s17, %s1301_s5 }
  0x45   : > { %732 = vmatmul.msk.f32.vlgmr.msra.gmra.mxu0 %vm367_vm0, %v358_v9  ;;  %449 = vmatpush.msra.mxu2 %v400_v21  ;;  %v479_v25 = vunpack.c.0.s8 %v478_v24  ;;  %v482_v30 = vld [vmem:[#allocation3] sm:$0xff]  ;;  %p980_p13 = scmp.lt.s32.totalorder %s978_s18, %s974_s25 }
  0x46   : > { %v499_v44 = vld [vmem:[#allocation4] sm:$0xff]  ;;  %p976_p7 = pnand %p975_p6, %p1136_p8 }
  0x47   : > { %450 = vmatpush.msra.mxu2 %v398_v22  ;;  %vm480_vm3 = vcmp.ne.s32.totalorder %v479_v25, 0  ;;  %p981_p0 = por %p980_p13, %p979_p12 }
  0x48   : > { %734 = vmatmul.msk.f32.vlgmr.msra.gmra.mxu2 %vm367_vm0, %v396_v8  ;;  %p977_p11 = pneg %p976_p7 }
  0x4a   : > { %p982_p1 = pnand %p981_p0, %p977_p11 }
  0xc1   : > { %v432_v13 = vpop.f32.mrf.mxu1 }
  0xc2   : > { %v388_v14 = vpop.f32.mrf.mxu0  ;;  %v433_v15 = vadd.f32 %v432_v13, %v407_v11 }
  0xc3   : > { %v389_v16 = vadd.f32 %v831_v12, %v388_v14 }
  0xc4   : > { %471 = vmatpush.xpose.msra.mxu3 %v433_v15 }
  0xc7   : > { %472 = vmatmul.f32.vlgmr.msra.gmra.mxu3 %v389_v16 }
  0xcb   : > { %v452_v37 = vpop.f32.mrf.mxu2 }
  0xcc   : > { %v453_v38 = vadd.f32 %v452_v37, %v408_v36 }
  0xce   : > { %532 = vmatpush.msrb.mxu3 %v453_v38 }
 0x14a   : > { %v473_v26 = vpop.f32.mrf.mxu3 }
 0x14b   : > { %v481_v27 = vsel %vm480_vm3, -1e+09, %v473_v26 }
 0x14c   : > { %v484_v28 = vsel %vm483_vm4, %v481_v27, -inf }
 0x14d   : > { %485 = vmax.xlane.f32.xlu0 %v484_v28 }
 0x1c0   : > { %v486_v31 = vpop.xlane.xlu0 %485 }
 0x1c1   : > { %v487_v32 = vmax.f32 %v482_v30, %v486_v31 }
 0x1c3   : > { %v488_v33 = vsub.f32 %v482_v30, %v487_v32  ;;  %539 = vst.msk [vmem:[#allocation3] sm:$0xff] %vm392_vm1, %v487_v32  ;;  %493 = vperm.xlu0 %828, %v487_v32  }
 0x1c5   : > { %v489_v34 = vmul.f32 1.442695, %v488_v33 }
 0x1c7   : > { %832 = vpow2.f32 %v489_v34 }
 0x1cd   : > { %v833_v35 = vpop.eup %832 }
 0x1ce   : > { %510 = vperm.xlu2 %830, %v833_v35   ;;  %v500_v45 = vmul.f32 %v833_v35, %v499_v44 }
 0x228   : > { %v511_v53 = vpop.permute.xlu2 %510 }
 0x229   : > { %v513_v58 = vmul.f32 0.0, %v511_v53 }
 0x235   : > { %v494_v39 = vpop.permute.xlu0 %493 }
 0x236   : > { %v496_v40 = vsub.f32 %v481_v27, %v494_v39 }
 0x238   : > { %v497_v41 = vmul.f32 1.442695, %v496_v40 }
 0x23a   : > { %834 = vpow2.f32 %v497_v41 }
 0x240   : > { %v835_v42 = vpop.eup %834 }
 0x241   : > { %735 = vmatmul.msk.f32.vlgmr.msrb.gmra.mxu3 %vm483_vm4, %v835_v42  ;;  %v501_v43 = vsel %vm483_vm4, %v835_v42, 0.0 }
 0x242   : > { %502 = vadd.xlane.f32.xlu1 %v501_v43 }
 0x2b5   : > { %v503_v46 = vpop.xlane.xlu1 %502 }
 0x2b6   : > { %v504_v47 = vadd.f32 %v503_v46, %v500_v45 }
 0x2b8   : > { %506 = vst.msk [vmem:[#allocation4] sm:$0xff] %vm392_vm1, %v504_v47 }
 0x2bf   : > { %v544_v48 = vld [vmem:[#allocation4] sm:$0xff] }
 0x2c0   : > { %547 = vperm.xlu1 %829, %v544_v48  }
 0x2c4   : > { %v534_v57 = vpop.f32.mrf.mxu3 }
 0x2c5   : > { %v537_v61 = vadd.f32 %v534_v57, %v513_v58 }
 0x332   : > { %v548_v49 = vpop.permute.xlu1 %547 }
 0x333   : > { %836 = vrcp.f32 %v548_v49  ;;  %v561_v54 = vand.u32 2147483648, %v548_v49  ;;  %v559_v56 = vand.u32 2147483647, %v548_v49  ;;  %vm555_vm6 = vweird.f32 %v548_v49 }
 0x335   : > { %v562_v60 = vor.u32 1.1754944e-38, %v561_v54  ;;  %vm560_vm8 = vcmp.eq.f32.partialorder %v559_v56, 8.507059e+37 }
 0x339   : > { %v837_v50 = vpop.eup %836 }
 0x33a   : > { %v551_v51 = vmul.f32 %v837_v50, %v548_v49  ;;  %vm556_vm5 = vweird.f32 %v837_v50 }
 0x33b   : > { %vm557_vm7 = vmor %vm555_vm6, %vm556_vm5 }
 0x33c   : > { %v552_v52 = vsub.f32 1.0, %v551_v51 }
 0x33e   : > { %v553_v55 = vmul.f32 %v837_v50, %v552_v52 }
 0x340   : > { %v554_v59 = vadd.f32 %v837_v50, %v553_v55 }
 0x342   : > { %v558_v62 = vsel %vm557_vm7, %v837_v50, %v554_v59 }
 0x343   : > { %v563_v63 = vsel %vm560_vm8, %v562_v60, %v558_v62 }
 0x344   : > { %v564_v0 = vmul.f32 %v563_v63, %v537_v61 }
 0x346   : > { %565 = vst [vmem:[%s351_s13] sm:$0xff] %v564_v0 }
 0x347   : > { %985 = shalt.err (!%p982_p1)
}
 0x348   : > { %750 = dma.vmem_to_hbm [thread:$0]  (%p1136_p8), %s580_s21, 128, %s582_s15, %s567_s9  }
 0x349 PF: > { %s1326_s1 = sld [smem:[#allocation19_spill]]  ;;  %p767_p2 = pnand %p719_p10, %p1143_p9 }
 0x34a   : > { %s1328_s6 = sld [smem:[#allocation21_spill]] }
 0x34b   : > { %p768_p4 = pneg %p767_p2 }
 0x34f   : > { %s593_s7 = sand.u32 1, %s1326_s1  }
 0x350   : > { %s594_s8 = scalar_lea.sflag [#allocation8], %s593_s7 }
 0x351   : > { %1023 = dma.done.wait (%p768_p4), %s594_s8, 128  }
 0x352   : > { %1025 = vsyncadd (%p768_p4), %s594_s8, 4294967168  ;;  %s25_s23 = sadd.s32 1, %s1328_s6   ;;  %s1329_s24 = sld [smem:[#allocation20_spill]] }
 0x353   : > { %p22_p5 = scmp.ge.s32.totalorder %s25_s23, 4   ;;  %s1330_s20 = sld [smem:[#allocation24_spill]] }
 0x354   : > { %s1331_s30 = sld [smem:[#allocation22_spill]]  ;;  %s1332_s18 = smov %s1032_s19 }
 0x355   : > { %s1334_s21 = smov %s1044_s22 }
 0x356   :  { %24 = sbr.rel (!%p22_p5) target bundleno = 12 (0xc), region = 121 }
 0x358   : > { %s1333_s19 = smov %s1329_s24 }
 0x35a   : > { %s1335_s22 = smov %s1331_s30 }
 0x35b   :  { %600 = vsyncpa [#allocation7], 1 }
 0x35c   :  { %602 = vsyncpa [#allocation7 + $0x1], 1 }
 0x35d   :  { %603 = vsyncpa [#allocation10], 1 }
 0x35e   :  { %605 = vsyncpa [#allocation10 + $0x1], 1 }
 0x35f   :  { %606 = vsyncpa [#allocation13], 1 }
 0x360   :  { %607 = vsyncpa [#allocation8], 1 }
 0x361   :  { %609 = vsyncpa [#allocation8 + $0x1], 1 }

</bundles_post_ra>
